<compile_context>
chip_gen: v6e
topology: v6e:2x2x1
jax: 0.10.0
libtpu: 0.0.40
codegen_flags: <defaults>
</compile_context>

<pallas_src>
import functools

import jax
import jax.numpy as jnp
from jax.experimental import pallas as pl
from jax.experimental.pallas import tpu as pltpu


def _round_up(x, m):
    return ((x + m - 1) // m) * m


def _sublane_multiple(*dtypes):
    mult = 8
    for d in dtypes:
        mult = max(mult, {4: 8, 2: 16, 1: 32}.get(jnp.dtype(d).itemsize, 8))
    return mult


def _epilogue(x_f32, res_ref, p_ref, o_ref, *, eps, inv_h):
    """Bias + residual add + LayerNorm (f32 math), write out tile."""
    bias = p_ref[0:1, :].astype(jnp.float32)
    gamma = p_ref[1:2, :].astype(jnp.float32)
    beta = p_ref[2:3, :].astype(jnp.float32)

    # Dropout is the identity at inference time.
    # TODO(synk): training-mode dropout (pltpu.prng_random_bits mask) not wired in.
    x = x_f32 + bias + res_ref[...].astype(jnp.float32)

    # One-pass LayerNorm statistics over the hidden (last) axis.
    s1 = jnp.sum(x, axis=-1, keepdims=True)
    s2 = jnp.sum(x * x, axis=-1, keepdims=True)
    mean = s1 * inv_h
    # Clamp: E[x^2]-E[x]^2 can cancel slightly negative in f32 -> NaN via rsqrt.
    var = jnp.maximum(s2 * inv_h - mean * mean, 0.0)
    scale = jax.lax.rsqrt(var + eps) * gamma        # EUP rsqrt, gamma folded in
    o_ref[...] = ((x - mean) * scale + beta).astype(o_ref.dtype)


def _output_kernel_resident(h_ref, res_ref, w_ref, p_ref, o_ref, *, eps, inv_h):
    # Full contraction in one MXU call: [tm, I] @ [I, H] -> f32.
    x = jnp.dot(h_ref[...], w_ref[...], preferred_element_type=jnp.float32)
    _epilogue(x, res_ref, p_ref, o_ref, eps=eps, inv_h=inv_h)


def _output_kernel_streamed(h_ref, res_ref, w_ref, p_ref, o_ref, acc_ref, *, eps, inv_h):
    k = pl.program_id(1)

    @pl.when(k == 0)
    def _init():
        acc_ref[...] = jnp.zeros_like(acc_ref)

    # Partial matmul for this K slice: [tm, tk] @ [tk, H] -> f32 accumulator.
    acc_ref[...] += jnp.dot(h_ref[...], w_ref[...],
                            preferred_element_type=jnp.float32)

    @pl.when(k == pl.num_programs(1) - 1)
    def _finalize():
        _epilogue(acc_ref[...], res_ref, p_ref, o_ref, eps=eps, inv_h=inv_h)


def summaryformer_output(hidden_states, input_tensor, weight, bias, gamma, beta,
                         *, eps=1e-12, tm=None, compute_dtype=None,
                         weight_resident_bytes=None, weight_buffers=2,
                         alias_residual=False):
    """hidden_states: [B, S, I]; input_tensor: [B, S, H]; weight: [I, H]."""
    B, S, I = hidden_states.shape
    H = input_tensor.shape[-1]
    M = B * S

    # Only the MXU operands benefit from a narrower compute dtype; the residual
    # is consumed in f32 on the VPU, so it stays in its original dtype.
    # (For production, cast the weight once outside the hot path.)
    if compute_dtype is not None:
        hidden_states = hidden_states.astype(compute_dtype)
        weight = weight.astype(compute_dtype)

    out_dtype = input_tensor.dtype

    h2d = hidden_states.reshape(M, I)
    r2d = input_tensor.reshape(M, H)
    # Pack the three grid-invariant [H] vectors into one [3, H] block (one DMA).
    params = jnp.stack([bias, gamma, beta]).astype(jnp.float32)

    h_item = jnp.dtype(h2d.dtype).itemsize
    r_item = jnp.dtype(r2d.dtype).itemsize
    o_item = jnp.dtype(out_dtype).itemsize
    w_item = jnp.dtype(weight.dtype).itemsize

    # VMEM capacity with ~15% headroom for compiler scratch / semaphores
    # (matters most on v7x's 64 MiB per TensorCore).
    try:
        vmem_phys = int(getattr(pltpu.get_tpu_info(), "vmem_capacity_bytes"))
    except Exception:
        vmem_phys = 64 * 1024 * 1024
    vmem_cap = int(vmem_phys * 0.85)

    # --- Resident-weight fast path decision ------------------------------
    weight_bytes = I * H * w_item
    if weight_resident_bytes is None:
        weight_resident_bytes = min(24 * 1024 * 1024, vmem_cap // 4)
    resident = weight_bytes <= weight_resident_bytes

    sub = _sublane_multiple(h2d.dtype, r2d.dtype, out_dtype)

    if resident:
        tk = I
        num_k = 1
    else:
        # K-streamed path: prefer 512/256 (full-width feeds for v6e/v7x MXU).
        tk = None
        for cand in (512, 256, 128):
            if I % cand == 0:
                tk = cand
                break
        if tk is None:
            # Rare irregular I: zero-pad the contraction dim (zeros contribute
            # nothing to the matmul).
            # TODO(synk): a masked ragged K block would avoid this extra HBM pass.
            tk = 512 if I > 512 else _round_up(I, 128)
            I_pad = _round_up(I, tk)
            h2d = jnp.pad(h2d, ((0, 0), (0, I_pad - I)))
            weight = jnp.pad(weight, ((0, I_pad - I), (0, 0)))
            I = I_pad
        num_k = I // tk

    # --- Row tiling -------------------------------------------------------
    # Large tiles amortize per-step overhead; for the K-streamed path tm also
    # sets the weight-traffic arithmetic intensity (~tm flops/byte).
    tm_target = tm if tm is not None else (256 if resident else 512)
    tm_eff = min(int(tm_target), _round_up(M, sub))
    tm_eff = max(sub, _round_up(tm_eff, sub))

    def vmem_estimate(tm_rows):
        est = (2 * tm_rows * tk * h_item          # hidden tile (double-buffered)
               + 2 * tm_rows * H * r_item         # residual tile
               + 2 * tm_rows * H * o_item         # output tile
               + 2 * 8 * H * 4)                   # packed params (sublane-padded)
        if resident:
            est += 2 * I * H * w_item             # resident weight (conservative)
        else:
            est += max(2, weight_buffers) * tk * H * w_item   # weight K slice
            est += tm_rows * H * 4                # f32 accumulator scratch
        return est

    # Shrink the row tile until the tile set fits (handles v7x's smaller VMEM
    # and f32 compute at large H without caller intervention).
    while vmem_estimate(tm_eff) > vmem_cap and tm_eff > sub:
        tm_eff = max(sub, _round_up(tm_eff // 2, sub))

    num_m = pl.cdiv(M, tm_eff)
    # v7x shards the "parallel" row axis across its two TensorCores; make sure
    # there are at least two row tiles whenever M allows it.
    if num_m < 2 and M > sub:
        tm_eff = max(sub, _round_up(pl.cdiv(M, 2), sub))
        num_m = pl.cdiv(M, tm_eff)

    vmem_limit = min(max(int(vmem_estimate(tm_eff) * 1.5) + (4 << 20),
                         32 * 1024 * 1024),
                     vmem_cap)

    io_aliases = {1: 0} if alias_residual else {}
    inv_h = float(1.0 / H)

    if resident:
        kernel = functools.partial(_output_kernel_resident,
                                   eps=float(eps), inv_h=inv_h)
        grid_spec = pltpu.PrefetchScalarGridSpec(
            num_scalar_prefetch=0,
            grid=(num_m,),
            in_specs=[
                pl.BlockSpec((tm_eff, I), lambda i: (i, 0)),   # hidden rows
                pl.BlockSpec((tm_eff, H), lambda i: (i, 0)),   # residual rows
                pl.BlockSpec((I, H), lambda i: (0, 0)),        # resident weight
                pl.BlockSpec((3, H), lambda i: (0, 0)),        # [bias;gamma;beta]
            ],
            out_specs=pl.BlockSpec((tm_eff, H), lambda i: (i, 0)),
            scratch_shapes=[],
        )
        dim_sem = ("parallel",)
    else:
        kernel = functools.partial(_output_kernel_streamed,
                                   eps=float(eps), inv_h=inv_h)
        w_spec_kwargs = {}
        if weight_buffers > 2:
            # v5e: a third weight buffer hides the DMA ramp at row-tile boundaries.
            w_spec_kwargs["pipeline_mode"] = pl.Buffered(int(weight_buffers))
        grid_spec = pltpu.PrefetchScalarGridSpec(
            num_scalar_prefetch=0,
            grid=(num_m, num_k),
            in_specs=[
                pl.BlockSpec((tm_eff, tk), lambda i, k: (i, k)),           # hidden tile
                pl.BlockSpec((tm_eff, H), lambda i, k: (i, 0)),            # residual tile
                pl.BlockSpec((tk, H), lambda i, k: (k, 0), **w_spec_kwargs),  # weight slice
                pl.BlockSpec((3, H), lambda i, k: (0, 0)),                 # params
            ],
            out_specs=pl.BlockSpec((tm_eff, H), lambda i, k: (i, 0)),
            scratch_shapes=[pltpu.VMEM((tm_eff, H), jnp.float32)],
        )
        dim_sem = ("parallel", "arbitrary")

    out = pl.pallas_call(
        kernel,
        out_shape=jax.ShapeDtypeStruct((M, H), out_dtype),
        grid_spec=grid_spec,
        compiler_params=pltpu.CompilerParams(
            dimension_semantics=dim_sem,
            vmem_limit_bytes=vmem_limit,
        ),
        input_output_aliases=io_aliases,
    )(h2d, r2d, weight, params)

    return out.reshape(B, S, H)


def reference(hidden_states, input_tensor, weight, bias, gamma, beta, eps=1e-12):
    x = jnp.einsum("bsi,ih->bsh", hidden_states, weight) + bias
    x = x + input_tensor
    mean = jnp.mean(x, axis=-1, keepdims=True)
    var = jnp.mean((x - mean) ** 2, axis=-1, keepdims=True)
    return (x - mean) * jax.lax.rsqrt(var + eps) * gamma + beta


if __name__ == "__main__":
    # Small config: batch=2, seq=8, hidden_size=32, intermediate_size=64.
    B, S, H, I = 2, 8, 32, 64
    eps = 1e-12

    key = jax.random.PRNGKey(0)
    k_h, k_r, k_w, k_b, k_g, k_be = jax.random.split(key, 6)

    hidden_states = jax.random.normal(k_h, (B, S, I), dtype=jnp.float32)
    input_tensor = jax.random.normal(k_r, (B, S, H), dtype=jnp.float32)

    # Deterministic parameter init (synthetic, not a checkpoint).
    weight = jax.random.normal(k_w, (I, H), dtype=jnp.float32) * (1.0 / I ** 0.5)
    bias = jax.random.normal(k_b, (H,), dtype=jnp.float32) * 0.02
    gamma = 1.0 + 0.1 * jax.random.normal(k_g, (H,), dtype=jnp.float32)
    beta = 0.1 * jax.random.normal(k_be, (H,), dtype=jnp.float32)

    out = summaryformer_output(hidden_states, input_tensor, weight, bias,
                               gamma, beta, eps=eps)
    out = jax.block_until_ready(out)

    ref = reference(hidden_states, input_tensor, weight, bias, gamma, beta, eps)
    assert out.shape == (B, S, H)
    assert jnp.allclose(out, ref, atol=1e-4, rtol=1e-4), "mismatch vs reference"

    print("KERNEL_OK")
</pallas_src>

<mosaic_0001>
module attributes {stable_mosaic.version = 11 : i64} {
  func.func @_output_kernel_resident(%arg0: i32, %arg1: memref<8x64xf32, #tpu.memory_space<vmem>>, %arg2: memref<8x32xf32, #tpu.memory_space<vmem>>, %arg3: memref<64x32xf32, #tpu.memory_space<vmem>>, %arg4: memref<3x32xf32, #tpu.memory_space<vmem>>, %arg5: memref<8x32xf32, #tpu.memory_space<vmem>>) attributes {dimension_semantics = [#tpu.dimension_semantics<parallel>], iteration_bounds = array<i64: 2>, scalar_prefetch = 0 : i64, scratch_operands = 0 : i64, tpu.core_type = #tpu.core_type<tc>, window_params = [{transform_indices = @transform_0, window_bounds = array<i64: 8, 64>}, {transform_indices = @transform_1, window_bounds = array<i64: 8, 32>}, {pipeline_mode = #tpu.pipeline_mode<synchronous>, transform_indices = @transform_2, window_bounds = array<i64: 64, 32>}, {pipeline_mode = #tpu.pipeline_mode<synchronous>, transform_indices = @transform_3, window_bounds = array<i64: 3, 32>}, {transform_indices = @transform_4, window_bounds = array<i64: 8, 32>}]} {
    %c0 = arith.constant 0 : index
    %c0_0 = arith.constant 0 : index
    %0 = vector.load %arg1[%c0, %c0_0] : memref<8x64xf32, #tpu.memory_space<vmem>>, vector<8x64xf32>
    %c0_1 = arith.constant 0 : index
    %c0_2 = arith.constant 0 : index
    %1 = vector.load %arg3[%c0_1, %c0_2] : memref<64x32xf32, #tpu.memory_space<vmem>>, vector<64x32xf32>
    %cst = arith.constant dense<0.000000e+00> : vector<8x32xf32>
    %2 = tpu.matmul %0, %1, %cst {dimension_numbers = #tpu.dot_dimension_numbers<[1], [0], [0], [1], [0, 0, 1, 1], [], []>} : vector<8x64xf32>, vector<64x32xf32>, vector<8x32xf32> -> vector<8x32xf32>
    %c0_3 = arith.constant 0 : index
    %c0_4 = arith.constant 0 : index
    %3 = vector.load %arg4[%c0_3, %c0_4] : memref<3x32xf32, #tpu.memory_space<vmem>>, vector<1x32xf32>
    %c1 = arith.constant 1 : index
    %c0_5 = arith.constant 0 : index
    %4 = vector.load %arg4[%c1, %c0_5] : memref<3x32xf32, #tpu.memory_space<vmem>>, vector<1x32xf32>
    %c2 = arith.constant 2 : index
    %c0_6 = arith.constant 0 : index
    %5 = vector.load %arg4[%c2, %c0_6] : memref<3x32xf32, #tpu.memory_space<vmem>>, vector<1x32xf32>
    %6 = vector.broadcast %3 : vector<1x32xf32> to vector<8x32xf32>
    %7 = arith.addf %2, %6 : vector<8x32xf32>
    %c0_7 = arith.constant 0 : index
    %c0_8 = arith.constant 0 : index
    %8 = vector.load %arg2[%c0_7, %c0_8] : memref<8x32xf32, #tpu.memory_space<vmem>>, vector<8x32xf32>
    %9 = arith.addf %7, %8 : vector<8x32xf32>
    %cst_9 = arith.constant dense<0.000000e+00> : vector<8xf32>
    %10 = vector.multi_reduction <add>, %9, %cst_9 [1] : vector<8x32xf32> to vector<8xf32>
    %11 = vector.shape_cast %10 : vector<8xf32> to vector<8x1xf32>
    %12 = arith.mulf %9, %9 : vector<8x32xf32>
    %cst_10 = arith.constant dense<0.000000e+00> : vector<8xf32>
    %13 = vector.multi_reduction <add>, %12, %cst_10 [1] : vector<8x32xf32> to vector<8xf32>
    %14 = vector.shape_cast %13 : vector<8xf32> to vector<8x1xf32>
    %cst_11 = arith.constant 3.125000e-02 : f32
    %15 = vector.broadcast %cst_11 : f32 to vector<8x1xf32>
    %16 = arith.mulf %11, %15 : vector<8x1xf32>
    %cst_12 = arith.constant 3.125000e-02 : f32
    %17 = vector.broadcast %cst_12 : f32 to vector<8x1xf32>
    %18 = arith.mulf %14, %17 : vector<8x1xf32>
    %19 = arith.mulf %16, %16 : vector<8x1xf32>
    %20 = arith.subf %18, %19 : vector<8x1xf32>
    %cst_13 = arith.constant 0.000000e+00 : f32
    %21 = vector.broadcast %cst_13 : f32 to vector<8x1xf32>
    %22 = arith.maximumf %20, %21 : vector<8x1xf32>
    %cst_14 = arith.constant 9.99999996E-13 : f32
    %23 = vector.broadcast %cst_14 : f32 to vector<8x1xf32>
    %24 = arith.addf %22, %23 : vector<8x1xf32>
    %25 = math.rsqrt %24 : vector<8x1xf32>
    %26 = vector.broadcast %25 : vector<8x1xf32> to vector<8x32xf32>
    %27 = vector.broadcast %4 : vector<1x32xf32> to vector<8x32xf32>
    %28 = arith.mulf %26, %27 : vector<8x32xf32>
    %29 = vector.broadcast %16 : vector<8x1xf32> to vector<8x32xf32>
    %30 = arith.subf %9, %29 : vector<8x32xf32>
    %31 = arith.mulf %30, %28 : vector<8x32xf32>
    %32 = vector.broadcast %5 : vector<1x32xf32> to vector<8x32xf32>
    %33 = arith.addf %31, %32 : vector<8x32xf32>
    %c0_15 = arith.constant 0 : index
    %c0_16 = arith.constant 0 : index
    %34 = vector.load %arg5[%c0_15, %c0_16] : memref<8x32xf32, #tpu.memory_space<vmem>>, vector<8x32xf32>
    tpu.vector_store %arg5[%c0_15, %c0_16], %33 {strides = array<i32>} : memref<8x32xf32, #tpu.memory_space<vmem>>, vector<8x32xf32>,
    return
  }
  func.func @transform_0(%arg0: i32) -> (i32, i32) {
    %c0_i32 = arith.constant 0 : i32
    %c0_i32_0 = arith.constant 0 : i32
    return %arg0, %c0_i32 : i32, i32
  }
  func.func @transform_1(%arg0: i32) -> (i32, i32) {
    %c0_i32 = arith.constant 0 : i32
    %c0_i32_0 = arith.constant 0 : i32
    return %arg0, %c0_i32 : i32, i32
  }
  func.func @transform_2(%arg0: i32) -> (i32, i32) {
    %c0_i32 = arith.constant 0 : i32
    %c0_i32_0 = arith.constant 0 : i32
    %c0_i32_1 = arith.constant 0 : i32
    return %c0_i32, %c0_i32_0 : i32, i32
  }
  func.func @transform_3(%arg0: i32) -> (i32, i32) {
    %c0_i32 = arith.constant 0 : i32
    %c0_i32_0 = arith.constant 0 : i32
    %c0_i32_1 = arith.constant 0 : i32
    return %c0_i32, %c0_i32_0 : i32, i32
  }
  func.func @transform_4(%arg0: i32) -> (i32, i32) {
    %c0_i32 = arith.constant 0 : i32
    %c0_i32_0 = arith.constant 0 : i32
    return %arg0, %c0_i32 : i32, i32
  }
}

</mosaic_0001>

<bundles_post_ra>
// kernel: tpu_custom_call.1
= control target key start
LH: loop header
LB: loop body
LE: loop exit
PB: predicated region body
PF: predicated region fallthrough
CT: control target
= control target key end

     0   :  { %9 = vsyncpa [#allocation3], 0  ;;  %s717_s0 = inlined_call_operand.vmem [shape: f32[16,64], index: 0, kind: input, shape index: {}]   ;;  %s718_s1 = inlined_call_operand.vmem [shape: f32[16,32], index: 1, kind: input, shape index: {}]   ;;  %s719_s2 = inlined_call_operand.vmem [shape: f32[64,32], index: 2, kind: input, shape index: {}]   ;;  %s720_s3 = inlined_call_operand.vmem [shape: f32[3,32], index: 3, kind: input, shape index: {}]   ;;  %s721_s4 = inlined_call_operand.hbm [shape: f32[16,32], index: 4, kind: output, shape index: {}]  }
   0x1   :  { %11 = vsyncpa [#allocation3 + $0x1], 0  ;;  %s591_s15 = smov 0   ;;  %s593_s16 = smov 0  }
   0x2   :  { %s595_s17 = smov 0   ;;  %s597_s18 = smov 0  }
   0x3 LB: > { %s612_s19 = sadd.s32 4294967295, %s561_s18   ;;  %s415_s20 = sadd.s32 4294967294, %s561_s18   ;;  %s561_s18 = sphi %s597_s18, %s727_s18   ;;  %s557_s17 = sphi %s595_s17, %s726_s17   ;;  %s553_s16 = sphi %s593_s16, %s725_s16   ;;  %s549_s15 = sphi %s591_s15, %s724_s15  }
   0x4   : > { %s616_s21 = sadd.s32 1, %s561_s18   ;;  %s118_s22 = sadd.s32 1, %s557_s17 }
   0x5   : > { %s115_s23 = ssub.s32 %s561_s18, %s616_s21  ;;  %p128_p0 = scmp.ne.s32.totalorder %s557_s17, %s553_s16 }
   0x6   : > { %p116_p1 = scmp.eq.s32.totalorder %s115_s23, 0  ;;  %p129_p2 = scmp.eq.s32.totalorder %s612_s19, 1 }
   0x7   : > { %p134_p3 = scmp.ne.s32.totalorder %s553_s16, %s549_s15  ;;  %p135_p4 = scmp.eq.s32.totalorder %s415_s20, 1 }
   0x8   : > { %s627_s24 = scalar_select %p116_p1, %s557_s17, %s118_s22  }
   0x9   : > { %p629_p5 = por %p129_p2, %p128_p0  ;;  %p633_p6 = por %p135_p4, %p134_p3 }
   0xa   : > { %p418_p7 = scmp.ge.s32.totalorder %s561_s18, 1  ;;  %p173_p8 = scmp.lt.s32.totalorder %s561_s18, 3 }
   0xc   : > { %p174_p9 = pnand %p418_p7, %p173_p8 }
   0xd   : > { %p202_p10 = scmp.lt.s32.totalorder (!%p174_p9), %s612_s19, 1  ;;  %s199_s10 = sand.u32 (!%p174_p9), 1, %s553_s16  }
   0xe   : > { %177 = sbr.rel (%p174_p9) target bundleno = 417 (0x1a1), region = 36  ;;  %s419_s11 = sshll.u32 (!%p174_p9), %s199_s10, 3 }
   0xf   : > { %s427_s22 = sshll.u32 (!%p174_p9), %s612_s19, 7  ;;  %s201_s23 = scalar_lea.vmem (!%p174_p9), [#allocation2], %s419_s11 }
  0x10   : > { %s344_s27 = sshll.u32 (!%p174_p9), %s201_s23, 4  ;;  %s342_s30 = scalar_lea.hbm (!%p174_p9), %s721_s4, %s427_s22  ;;  %s345_s27 = int_to_ptr.vmem [resolvable:$true] %s344_s27 }
  0x11   : > { %s331_s5 = scalar_lea.sflag (!%p174_p9), [#allocation3], %s199_s10  ;;  %s501_s6 = scalar_lea.vmem (!%p174_p9), %s345_s27, 128 }
  0x12   : > { %p502_p11 = scmp.ne.s32.totalorder (!%p174_p9), %s345_s27, %s501_s6 }
  0x13   : > { %v218_v0 = vld [vmem:[%s719_s2 + $0x38] sm:$0xff]  ;;  %v563_v1 = vmov 0.0   ;;  %v217_v2 = vld [vmem:[%s719_s2 + $0x30] sm:$0xff]  ;;  %vm564_vm0 = vmmov 0   ;;  %v216_v3 = vld [vmem:[%s719_s2 + $0x28] sm:$0xff]  ;;  %s203_s7 = scalar_select %p202_p10, %s612_s19, 1 }
  0x14   : > { %439 = vmatprep.subr.mxu0 %v563_v1  ;;  %455 = vmatprep.mubr.msk.f32.mxu0 %vm564_vm0, %v563_v1  ;;  %v215_v4 = vld [vmem:[%s719_s2 + $0x20] sm:$0xff]  ;;  %v214_v5 = vld [vmem:[%s719_s2 + $0x18] sm:$0xff]  ;;  %v213_v6 = vld [vmem:[%s719_s2 + $0x10] sm:$0xff]  ;;  %vm226_vm1 = vcmask 523264   ;;  %vm302_vm2 = vcmask 261120   ;;  %p503_p12 = pnand %p502_p11, %p629_p5 }
  0x15   : > { %440 = vmatpush3.msra.mxu0 %v218_v0  ;;  %s420_s12 = sshll.u32 %s203_s7, 3  ;;  %v212_v7 = vld [vmem:[%s719_s2 + $0x8] sm:$0xff]  ;;  %v211_v8 = vld [vmem:[%s719_s2] sm:$0xff] }
  0x16   : > { %441 = vmatprep.subr.mxu0 %v563_v1  ;;  %s205_s28 = scalar_lea.vmem %s717_s0, %s420_s12  ;;  %s209_s7 = scalar_lea.vmem %s718_s1, %s420_s12  ;;  %v422_v10 = vld [vmem:[%s720_s3] ss:$0 sm:$0xff]  ;;  %v424_v27 = vld [vmem:[%s720_s3 + $0x1] ss:$0 sm:$0xff]  ;;  %v425_v31 = vld [vmem:[%s720_s3 + $0x2] ss:$0 sm:$0xff] }
  0x17   : > { %442 = vmatpush3.msra.mxu0 %v217_v2  ;;  %v210_v9 = vld [vmem:[%s205_s28] sm:$0xff]  ;;  %p504_p13 = pneg %p503_p12 }
  0x18   : > { %443 = vmatprep.subr.mxu0 %v563_v1  ;;  %v300_v12 = vld [vmem:[%s209_s7] sm:$0xff]  ;;  %s565_s7 = smov [#allocation2]  }
  0x19   : > { %444 = vmatpush3.msra.mxu0 %v216_v3  ;;  %s505_s8 = sshll.u32 %s565_s7, 4  ;;  %s506_s8 = int_to_ptr.vmem [resolvable:$false] %s505_s8 }
  0x1a   : > { %445 = vmatprep.subr.mxu0 %v563_v1  ;;  %s507_s19 = scalar_lea.vmem %s506_s8, 256  ;;  %p508_p0 = scmp.lt.s32.totalorder %s345_s27, %s506_s8 }
  0x1b   : > { %446 = vmatpush3.msra.mxu0 %v215_v4  ;;  %p509_p1 = scmp.lt.s32.totalorder %s507_s19, %s501_s6 }
  0x1c   : > { %447 = vmatprep.subr.mxu0 %v563_v1 }
  0x1d   : > { %448 = vmatpush3.msra.mxu0 %v214_v5  ;;  %p510_p2 = por %p509_p1, %p508_p0 }
  0x1e   : > { %449 = vmatprep.subr.mxu0 %v563_v1 }
  0x1f   : > { %450 = vmatpush3.msra.mxu0 %v213_v6  ;;  %p511_p3 = pnand %p510_p2, %p504_p13 }
  0x20   : > { %451 = vmatprep.subr.mxu0 %v563_v1 }
  0x21   : > { %452 = vmatpush3.msra.mxu0 %v212_v7 }
  0x22   : > { %453 = vmatprep.subr.mxu0 %v563_v1 }
  0x23   : > { %454 = vmatpush3.msra.mxu0 %v211_v8 }
  0x24   : > { %456 = vmatmul.mubr.msk.f32.vlgmr.msra.gmra.mxu0 %vm226_vm1, %v210_v9 }
  0xe4   : > { %v296_v11 = vpop.f32.mrf.mxu0 }
  0xe5   : > { %v297_v13 = vadd.f32 %v422_v10, %v296_v11 }
  0xe6   : > { %v457_v14 = vpop.f32.mrf.mxu0 }
  0xe7   : > { %v301_v15 = vadd.f32 %v300_v12, %v297_v13 }
  0xe9   : > { %v303_v16 = vsel %vm302_vm2, %v301_v15, 0.0  ;;  %v306_v17 = vmul.f32 %v301_v15, %v301_v15 }
  0xea   : > { %304 = vadd.xlane.f32.xlu0 %v303_v16 }
  0xeb   : > { %v307_v18 = vsel %vm302_vm2, %v306_v17, 0.0 }
  0xee   : > { %308 = vadd.xlane.f32.xlu0 %v307_v18 }
 0x173   : > { %v305_v19 = vpop.xlane.xlu0 %304 }
 0x174   : > { %v310_v20 = vmul.f32 0.03125, %v305_v19 }
 0x176   : > { %v312_v22 = vmul.f32 %v310_v20, %v310_v20  ;;  %v322_v29 = vsub.f32 %v301_v15, %v310_v20 }
 0x177   : > { %v309_v21 = vpop.xlane.xlu0 %308 }
 0x178   : > { %v311_v23 = vmul.f32 0.03125, %v309_v21 }
 0x17a   : > { %v313_v24 = vsub.f32 %v311_v23, %v312_v22 }
 0x17c   : > { %v314_v25 = vmax.f32 %v313_v24, 0.0 }
 0x17e   : > { %v315_v26 = vadd.f32 1e-12, %v314_v25 }
 0x180   : > { %499 = vrsqrt.f32 %v315_v26 }
 0x18d   : > { %v500_v28 = vpop.eup %499 }
 0x18e   : > { %v321_v30 = vmul.f32 %v500_v28, %v424_v27 }
 0x190   : > { %v323_v32 = vmul.f32 %v322_v29, %v321_v30 }
 0x192   : > { %v328_v33 = vadd.f32 %v425_v31, %v323_v32 }
 0x194   : > { %329 = vst.msk [vmem:[%s201_s23] sm:$0xff] %vm302_vm2, %v328_v33 }
 0x195   : > { %514 = shalt.err (!%p511_p3)
}
 0x196   : > { %s515_s9 = scalar_lea.hbm %s342_s30, 128  ;;  %s519_s12 = scalar_lea.hbm %s721_s4, 256 }
 0x197   : > { %p516_p4 = scmp.ne.s32.totalorder %s342_s30, %s515_s9  ;;  %p520_p9 = scmp.lt.s32.totalorder %s342_s30, %s721_s4 }
 0x198   : > { %p521_p10 = scmp.lt.s32.totalorder %s519_s12, %s515_s9 }
 0x199   : > { %p517_p7 = pnand %p516_p4, %p629_p5 }
 0x19a   : > { %p522_p11 = por %p521_p10, %p520_p9 }
 0x19b   : > { %p518_p8 = pneg %p517_p7 }
 0x19d   : > { %p523_p12 = pnand %p522_p11, %p518_p8 }
 0x19f   : > { %526 = shalt.err (!%p523_p12)
}
 0x1a0   : > { %458 = dma.vmem_to_hbm [thread:$0]  (%p629_p5), %s345_s27, 128, %s342_s30, %s331_s5  }
 0x1a1 PF: > { %p464_p13 = scmp.ge.s32.totalorder %s561_s18, 2  ;;  %s356_s20 = sand.u32 1, %s549_s15  }
 0x1a2   : > { %s357_s22 = scalar_lea.sflag [#allocation3], %s356_s20 }
 0x1a3   : > { %p461_p0 = pnand %p464_p13, %p633_p6 }
 0x1a5   : > { %p462_p1 = pneg %p461_p0 }
 0x1a7   : > { %544 = dma.done.wait (%p462_p1), %s357_s22, 128  }
 0x1a8   : > { %546 = vsyncadd (%p462_p1), %s357_s22, 4294967168  ;;  %p14_p2 = scmp.ge.s32.totalorder %s616_s21, 4   ;;  %s724_s15 = smov %s553_s16 }
 0x1a9   : > { %s725_s16 = smov %s557_s17  ;;  %s726_s17 = smov %s627_s24 }
 0x1aa   : > { %s727_s18 = smov %s616_s21  ;;  %16 = sbr.rel (!%p14_p2) target bundleno = 3 (0x3), region = 74 }
 0x1af   :  { %362 = vsyncpa [#allocation3], 1 }
 0x1b0   :  { %364 = vsyncpa [#allocation3 + $0x1], 1 }

</bundles_post_ra>
